<compile_context>
chip_gen: v5e
topology: v5e:2x2
jax: 0.10.0
libtpu: 0.0.40
codegen_flags: <defaults>
</compile_context>

<pallas_src>
import functools

import jax
import jax.numpy as jnp
from jax.experimental import pallas as pl
from jax.experimental.pallas import tpu as pltpu


_ROLL_JNP_CONVENTION = None  # cached result of the one-time rotate-direction probe


def _probe_roll_convention() -> bool:
    """True iff pltpu.roll follows jnp.roll semantics (out[i] == x[(i - shift) % n])."""
    global _ROLL_JNP_CONVENTION
    if _ROLL_JNP_CONVENTION is None:
        def probe_kernel(x_ref, o_ref):
            o_ref[...] = pltpu.roll(x_ref[...], 1, axis=1)

        with jax.ensure_compile_time_eval():
            x = jnp.arange(128, dtype=jnp.float32).reshape(1, 128)
            y = pl.pallas_call(
                probe_kernel,
                out_shape=jax.ShapeDtypeStruct((1, 128), jnp.float32),
            )(x)
            _ROLL_JNP_CONVENTION = bool(y[0, 0] == 127.0)
    return _ROLL_JNP_CONVENTION


def _shift_for_next(n: int, step: int) -> int:
    """Static shift s so that pltpu.roll(x, s, axis)[..., i] == x[..., (i + step) % n]."""
    if _probe_roll_convention():
        return (n - step) % n
    return step % n


def _smoothness_kernel(disp_ref, img_ref, mask_x_ref, mask_y_ref, out_ref,
                       acc_x_ref, acc_y_ref, *,
                       n_disp_ch, n_img_ch, shift_1, shift_w, inv_x, inv_y):
    b = pl.program_id(0)

    @pl.when(b == 0)
    def _init():
        acc_x_ref[...] = jnp.zeros_like(acc_x_ref)
        acc_y_ref[...] = jnp.zeros_like(acc_y_ref)

    mask_x = mask_x_ref[...]   # (1, HWp) 0/1 validity masks (also zero padding / wrap)
    mask_y = mask_y_ref[...]

    # Edge-aware weights from the image: exp(-mean_c |dI|).  The channel loop keeps every
    # rolled / elementwise array 2D and lane-dense: (nb, HWp).
    gx = None
    gy = None
    for c in range(n_img_ch):
        ic = img_ref[:, c, :].astype(jnp.float32)                    # (nb, HWp)
        dx = jnp.abs(ic - pltpu.roll(ic, shift_1, axis=1))           # |I[p] - I[p+1]|
        dy = jnp.abs(ic - pltpu.roll(ic, shift_w, axis=1))           # |I[p] - I[p+W]|
        gx = dx if gx is None else gx + dx
        gy = dy if gy is None else gy + dy
    w_x = jnp.exp(gx * (-1.0 / n_img_ch)) * mask_x                   # (nb, HWp)
    w_y = jnp.exp(gy * (-1.0 / n_img_ch)) * mask_y

    # Weighted disparity gradients, accumulated elementwise; reduction/scaling is deferred.
    for c in range(n_disp_ch):
        dc = disp_ref[:, c, :].astype(jnp.float32)                   # (nb, HWp)
        acc_x_ref[...] += jnp.abs(dc - pltpu.roll(dc, shift_1, axis=1)) * w_x
        acc_y_ref[...] += jnp.abs(dc - pltpu.roll(dc, shift_w, axis=1)) * w_y

    @pl.when(b == pl.num_programs(0) - 1)
    def _finalize():
        total = (jnp.sum(acc_x_ref[...]) * inv_x
                 + jnp.sum(acc_y_ref[...]) * inv_y)
        out_ref[...] = jnp.zeros_like(out_ref) + total


def smoothness_loss(disp, img, *, target_block_bytes=2 * 1024 * 1024):
    """Pallas TPU implementation of SmoothnessLoss.forward(disp, img)."""
    N, Cd, H, W = disp.shape
    Ni, Ci, Hi, Wi = img.shape
    assert (N, H, W) == (Ni, Hi, Wi), "disp/img must share batch and spatial dims"
    assert H >= 2 and W >= 2, "need at least 2x2 spatial extent"

    HW = H * W
    HWp = ((HW + 127) // 128) * 128      # lane-dense flattened spatial axis

    # Flatten spatial dims (free reshape); zero-pad to a lane multiple if needed
    # (padded positions are masked out).
    disp_f = disp.reshape(N, Cd, HW)
    img_f = img.reshape(N, Ci, HW)
    if HWp != HW:
        pad = ((0, 0), (0, 0), (0, HWp - HW))
        disp_f = jnp.pad(disp_f, pad)
        img_f = jnp.pad(img_f, pad)

    # Batch-block size: largest divisor of N whose block stays under the byte target,
    # so tiny images still produce reasonably sized DMAs per grid step.
    bytes_per_batch = (Cd + Ci) * HWp * 4
    nb = int(max(1, min(N, target_block_bytes // max(1, bytes_per_batch))))
    while N % nb != 0:
        nb -= 1
    num_blocks = N // nb

    # Validity masks over the flattened (padded) spatial axis.
    f_idx = jnp.arange(HWp, dtype=jnp.int32)
    mask_x = ((f_idx < HW) & (f_idx % W < W - 1)).astype(jnp.float32).reshape(1, HWp)
    mask_y = (f_idx < (H - 1) * W).astype(jnp.float32).reshape(1, HWp)

    # Static roll amounts that fetch the +1 / +W neighbour along the flat axis.
    shift_1 = _shift_for_next(HWp, 1)
    shift_w = _shift_for_next(HWp, W)

    inv_x = 1.0 / float(N * Cd * H * (W - 1))
    inv_y = 1.0 / float(N * Cd * (H - 1) * W)

    kernel = functools.partial(
        _smoothness_kernel,
        n_disp_ch=Cd, n_img_ch=Ci,
        shift_1=shift_1, shift_w=shift_w,
        inv_x=inv_x, inv_y=inv_y)

    # TODO(synk): for very large single images (e.g. 3x768x1280 vs v7x's 64 MiB VMEM) add a
    # spatial grid axis with a one-row halo instead of loading the whole image per step.
    # TODO(synk): a per-block partial output with a "parallel" batch axis would let v7x's two
    # TensorCores split the grid; kept the single resident accumulator here for simplicity.
    out = pl.pallas_call(
        kernel,
        out_shape=jax.ShapeDtypeStruct((1, 1), jnp.float32),
        grid_spec=pltpu.PrefetchScalarGridSpec(
            num_scalar_prefetch=0,
            grid=(num_blocks,),
            in_specs=[
                pl.BlockSpec((nb, Cd, HWp), lambda b: (b, 0, 0)),
                pl.BlockSpec((nb, Ci, HWp), lambda b: (b, 0, 0)),
                pl.BlockSpec((1, HWp), lambda b: (0, 0)),
                pl.BlockSpec((1, HWp), lambda b: (0, 0)),
            ],
            out_specs=pl.BlockSpec((1, 1), lambda b: (0, 0)),
            scratch_shapes=[
                pltpu.VMEM((nb, HWp), jnp.float32),
                pltpu.VMEM((nb, HWp), jnp.float32),
            ],
        ),
        compiler_params=pltpu.CompilerParams(
            dimension_semantics=("arbitrary",)),  # grid axis carries the accumulator
    )(disp_f, img_f, mask_x, mask_y)
    return out[0, 0]


def smoothness_loss_ref(disp, img):
    """Pure-JAX reference mirroring the PyTorch forward exactly."""
    grad_disp_x = jnp.abs(disp[:, :, :, :-1] - disp[:, :, :, 1:])
    grad_disp_y = jnp.abs(disp[:, :, :-1, :] - disp[:, :, 1:, :])
    grad_img_x = jnp.mean(jnp.abs(img[:, :, :, :-1] - img[:, :, :, 1:]), axis=1, keepdims=True)
    grad_img_y = jnp.mean(jnp.abs(img[:, :, :-1, :] - img[:, :, 1:, :]), axis=1, keepdims=True)
    grad_disp_x = grad_disp_x * jnp.exp(-grad_img_x)
    grad_disp_y = grad_disp_y * jnp.exp(-grad_img_y)
    return grad_disp_x.mean() + grad_disp_y.mean()


if __name__ == "__main__":
    key = jax.random.PRNGKey(0)
    k_disp, k_img = jax.random.split(key)

    N, Cd, Ci, H, W = 2, 1, 3, 16, 16
    disp = jax.random.uniform(k_disp, (N, Cd, H, W), dtype=jnp.float32)
    img = jax.random.uniform(k_img, (N, Ci, H, W), dtype=jnp.float32)

    loss = jax.block_until_ready(smoothness_loss(disp, img))
    ref = jax.block_until_ready(smoothness_loss_ref(disp, img))

    assert jnp.allclose(loss, ref, rtol=1e-5, atol=1e-6), (loss, ref)
    print("KERNEL_OK")
</pallas_src>

<mosaic_0001>
module attributes {stable_mosaic.version = 11 : i64} {
  func.func @probe_kernel(%arg0: memref<1x128xf32, #tpu.memory_space<vmem>>, %arg1: memref<1x128xf32, #tpu.memory_space<vmem>>) attributes {dimension_semantics = [], scalar_prefetch = 0 : i64, scratch_operands = 0 : i64, tpu.core_type = #tpu.core_type<tc>} {
    %c0 = arith.constant 0 : index
    %c0_0 = arith.constant 0 : index
    %0 = vector.load %arg0[%c0, %c0_0] : memref<1x128xf32, #tpu.memory_space<vmem>>, vector<1x128xf32>
    %c1_i32 = arith.constant 1 : i32
    %1 = tpu.dynamic_rotate %0 by %c1_i32 dim 1 : vector<1x128xf32>, i32 -> vector<1x128xf32>
    %c0_1 = arith.constant 0 : index
    %c0_2 = arith.constant 0 : index
    %2 = vector.load %arg1[%c0_1, %c0_2] : memref<1x128xf32, #tpu.memory_space<vmem>>, vector<1x128xf32>
    tpu.vector_store %arg1[%c0_1, %c0_2], %1 {strides = array<i32>} : memref<1x128xf32, #tpu.memory_space<vmem>>, vector<1x128xf32>,
    return
  }
}

</mosaic_0001>

<bundles_post_ra>
// kernel: tpu_custom_call.1
= control target key start
LH: loop header
LB: loop body
LE: loop exit
PB: predicated region body
PF: predicated region fallthrough
CT: control target
= control target key end

     0   :  { %6 = vsyncpa [#allocation3], 0  ;;  %s118_s0 = inlined_call_operand.hbm [shape: f32[1,128], index: 0, kind: input, shape index: {}]   ;;  %s119_s1 = inlined_call_operand.hbm [shape: f32[1,128], index: 1, kind: output, shape index: {}]  }
   0x1   :  { %7 = vsyncpa [#allocation4], 0  ;;  %s13_s8 = sshll.u32 %s118_s0, 4  ;;  %s99_s9 = smov [#allocation2]   ;;  %s14_s8 = int_to_ptr.hbm [resolvable:$true] %s13_s8 }
   0x2   :  { %s15_s10 = sshll.u32 %s99_s9, 4  ;;  %s16_s10 = int_to_ptr.vmem [resolvable:$true] %s15_s10 }
   0x3   :  { %18 = dma.hbm_to_vmem [thread:$0]  %s14_s8, 16, %s16_s10, [#allocation3]  }
   0x4   :  { %95 = dma.done.wait [#allocation3], 16  }
   0x5   :  { %96 = vsyncadd [#allocation3], 4294967280  ;;  %v23_v0 = vld [vmem:[#allocation2] sm:$0x1]  ;;  %s100_s11 = smov 1   ;;  %s101_s12 = smov [#allocation5]  }
   0x6   :  { %24 = vrot.lane.b32.xlu0 %v23_v0, %s100_s11  ;;  %s32_s13 = sshll.u32 %s101_s12, 4  ;;  %s34_s16 = sshll.u32 %s119_s1, 4  ;;  %s33_s13 = int_to_ptr.vmem [resolvable:$true] %s32_s13  ;;  %s35_s16 = int_to_ptr.hbm [resolvable:$true] %s34_s16 }
  0x78   :  { %v25_v1 = vpop.permute.xlu0 %24 }
  0x79   :  { %26 = vst [vmem:[#allocation5] sm:$0x1] %v25_v1 }
  0x7a   :  { %37 = dma.vmem_to_hbm [thread:$0]  %s33_s13, 16, %s35_s16, [#allocation4]  }
  0x7b   :  { %97 = dma.done.wait [#allocation4], 16  }
  0x7c   :  { %98 = vsyncadd [#allocation4], 4294967280 }
  0x7d   :  { %42 = vsyncpa [#allocation3], 1 }
  0x7e   :  { %43 = vsyncpa [#allocation4], 1 }

</bundles_post_ra>
